<compile_context>
chip_gen: v6e
topology: v6e:2x2x1
jax: 0.10.0
libtpu: 0.0.40
codegen_flags: <defaults>
</compile_context>

<pallas_src>
import functools

import jax
import jax.numpy as jnp
from jax.experimental import pallas as pl
from jax.experimental.pallas import tpu as pltpu


def _round_up(x, m):
    return (x + m - 1) // m * m


def _linear_kernel(x_ref, w_ref, b_ref, o_ref, acc_ref, *, apply_relu):
    """One (tm, tn) output tile, accumulating over the K grid axis."""
    k = pl.program_id(2)

    @pl.when(k == 0)
    def _():
        acc_ref[...] = jnp.zeros_like(acc_ref)

    acc_ref[...] += jnp.dot(x_ref[...], w_ref[...],
                            preferred_element_type=jnp.float32)

    @pl.when(k == pl.num_programs(2) - 1)
    def _():
        h = acc_ref[...] + b_ref[...]          # broadcast bias (1, tn)
        if apply_relu:
            h = jnp.maximum(h, 0.0)
        o_ref[...] = h.astype(o_ref.dtype)


def pallas_linear(x, w, b, *, apply_relu=False, tm=256, tn=256, tk=512):
    """out = (relu)(x @ w + b), padding rows/K/out to MXU & lane aligned tiles."""
    m, k = x.shape
    k2, n = w.shape
    assert k2 == k and b.shape == (n,)

    # Shrink tiles for small problems while keeping (8, 128) alignment.
    tm = min(tm, _round_up(m, 8))
    tn = min(tn, _round_up(n, 128))
    tk = min(tk, _round_up(k, 128))

    mp = _round_up(m, tm)
    kp = _round_up(k, tk)
    np_ = _round_up(n, tn)

    xp = jnp.pad(x, ((0, mp - m), (0, kp - k)))
    wp = jnp.pad(w, ((0, kp - k), (0, np_ - n)))
    bp = jnp.pad(b, (0, np_ - n)).reshape(1, np_)

    grid = (mp // tm, np_ // tn, kp // tk)

    # Rough VMEM footprint: double-buffered inputs/outputs + f32 accumulator.
    vmem_bytes = 4 * (2 * tm * tk + 2 * tk * tn + 2 * tn + 2 * tm * tn + tm * tn)
    vmem_limit = int(min(max(2 * vmem_bytes, 16 * 1024 * 1024), 48 * 1024 * 1024))

    cost = pl.CostEstimate(
        flops=2 * mp * kp * np_,
        transcendentals=0,
        bytes_accessed=4 * (mp * kp + kp * np_ + mp * np_ + np_),
    )

    out = pl.pallas_call(
        functools.partial(_linear_kernel, apply_relu=apply_relu),
        out_shape=jax.ShapeDtypeStruct((mp, np_), x.dtype),
        grid_spec=pltpu.PrefetchScalarGridSpec(
            num_scalar_prefetch=0,
            grid=grid,
            in_specs=[
                pl.BlockSpec((tm, tk), lambda i, j, kk: (i, kk)),
                pl.BlockSpec((tk, tn), lambda i, j, kk: (kk, j)),
                pl.BlockSpec((1, tn), lambda i, j, kk: (0, j)),
            ],
            out_specs=pl.BlockSpec((tm, tn), lambda i, j, kk: (i, j)),
            scratch_shapes=[pltpu.VMEM((tm, tn), jnp.float32)],
        ),
        compiler_params=pltpu.CompilerParams(
            dimension_semantics=("parallel", "parallel", "arbitrary"),
            vmem_limit_bytes=vmem_limit,
        ),
        cost_estimate=cost,
    )(xp, wp, bp)

    return out[:m, :n]


@jax.jit
def classifier_forward(params, adj_norm, features, pool):
    """Full Classifier forward: GCN1 -> GCN2 -> mean_nodes -> linear head."""
    w1, b1 = params["w1"], params["b1"]
    w2, b2 = params["w2"], params["b2"]
    wc, bc = params["wc"], params["bc"]

    # TODO(synk): DGL's sparse message passing / zero-in-degree passthrough is
    # modeled as a dense row-normalized adjacency matmul (all nodes have deg>=1).
    zero_in = jnp.zeros((features.shape[1],), features.dtype)
    h = pallas_linear(adj_norm, features, zero_in)            # mean over neighbors
    h = pallas_linear(h, w1, b1, apply_relu=True)             # GCN1 node update

    zero_hid = jnp.zeros((h.shape[1],), h.dtype)
    h = pallas_linear(adj_norm, h, zero_hid)                  # mean over neighbors
    h = pallas_linear(h, w2, b2, apply_relu=True)             # GCN2 node update

    zero_hid2 = jnp.zeros((h.shape[1],), h.dtype)
    hg = pallas_linear(pool, h, zero_hid2)                    # dgl.mean_nodes per graph
    logits = pallas_linear(hg, wc, bc)                        # classify head
    return logits


if __name__ == "__main__":
    N_NODES = 16      # total nodes across the batched graph
    IN_DIM = 32
    HIDDEN = 32
    N_CLASSES = 4
    N_GRAPHS = 2

    key = jax.random.PRNGKey(0)
    kx, kw1, kb1, kw2, kb2, kwc, kbc = jax.random.split(key, 7)

    def linear_init(kw, kb, fan_in, fan_out):
        bound = 1.0 / jnp.sqrt(jnp.float32(fan_in))
        w = jax.random.uniform(kw, (fan_in, fan_out), jnp.float32, -bound, bound)
        b = jax.random.uniform(kb, (fan_out,), jnp.float32, -bound, bound)
        return w, b

    w1, b1 = linear_init(kw1, kb1, IN_DIM, HIDDEN)
    w2, b2 = linear_init(kw2, kb2, HIDDEN, HIDDEN)
    wc, bc = linear_init(kwc, kbc, HIDDEN, N_CLASSES)
    params = dict(w1=w1, b1=b1, w2=w2, b2=b2, wc=wc, bc=bc)

    # Two 8-node ring graphs batched together. Row-normalized adjacency so
    # adj_norm @ H == mean over in-neighbor features (every node has degree 2).
    nodes_per_graph = N_NODES // N_GRAPHS
    rows, cols = [], []
    for g in range(N_GRAPHS):
        base = g * nodes_per_graph
        for i in range(nodes_per_graph):
            rows += [base + i, base + i]
            cols += [base + (i - 1) % nodes_per_graph,
                     base + (i + 1) % nodes_per_graph]
    adj = jnp.zeros((N_NODES, N_NODES), jnp.float32)
    adj = adj.at[jnp.array(rows), jnp.array(cols)].set(1.0)
    deg = adj.sum(axis=1, keepdims=True)
    adj_norm = adj / deg

    # Mean-pool matrix: one row per graph, 1/nodes_per_graph on its own nodes.
    pool = jnp.zeros((N_GRAPHS, N_NODES), jnp.float32)
    for g in range(N_GRAPHS):
        pool = pool.at[g, g * nodes_per_graph:(g + 1) * nodes_per_graph].set(
            1.0 / nodes_per_graph)

    features = jax.random.normal(kx, (N_NODES, IN_DIM), jnp.float32)

    logits = classifier_forward(params, adj_norm, features, pool)
    logits = jax.block_until_ready(logits)

    # Pure-JAX reference with identical math (same semantics as the PyTorch module).
    h_ref = jnp.maximum(adj_norm @ features @ w1 + b1, 0.0)
    h_ref = jnp.maximum(adj_norm @ h_ref @ w2 + b2, 0.0)
    hg_ref = pool @ h_ref
    ref = hg_ref @ wc + bc

    assert logits.shape == (N_GRAPHS, N_CLASSES)
    assert jnp.allclose(logits, ref, atol=1e-3, rtol=1e-3), (logits, ref)

    print("KERNEL_OK")
</pallas_src>

<mosaic_0001>
module attributes {stable_mosaic.version = 11 : i64} {
  func.func @_linear_kernel(%arg0: i32, %arg1: i32, %arg2: i32, %arg3: memref<16x128xf32, #tpu.memory_space<vmem>>, %arg4: memref<128x128xf32, #tpu.memory_space<vmem>>, %arg5: memref<1x128xf32, #tpu.memory_space<vmem>>, %arg6: memref<16x128xf32, #tpu.memory_space<vmem>>, %arg7: memref<16x128xf32, #tpu.memory_space<vmem>>) attributes {dimension_semantics = [#tpu.dimension_semantics<parallel>, #tpu.dimension_semantics<parallel>, #tpu.dimension_semantics<arbitrary>], iteration_bounds = array<i64: 1, 1, 1>, scalar_prefetch = 0 : i64, scratch_operands = 1 : i64, tpu.core_type = #tpu.core_type<tc>, window_params = [{transform_indices = @transform_0, window_bounds = array<i64: 16, 128>}, {transform_indices = @transform_1, window_bounds = array<i64: 128, 128>}, {transform_indices = @transform_2, window_bounds = array<i64: 1, 128>}, {transform_indices = @transform_3, window_bounds = array<i64: 16, 128>}]} {
    %c0_i32 = arith.constant 0 : i32
    %0 = arith.cmpi eq, %arg2, %c0_i32 : i32
    %1 = arith.extui %0 : i1 to i32
    %c0_i32_0 = arith.constant 0 : i32
    %2 = arith.cmpi ne, %1, %c0_i32_0 : i32
    scf.if %2 {
      %cst_10 = arith.constant 0.000000e+00 : f32
      %12 = vector.broadcast %cst_10 : f32 to vector<16x128xf32>
      %c0_11 = arith.constant 0 : index
      %c0_12 = arith.constant 0 : index
      %13 = vector.load %arg7[%c0_11, %c0_12] : memref<16x128xf32, #tpu.memory_space<vmem>>, vector<16x128xf32>
      tpu.vector_store %arg7[%c0_11, %c0_12], %12 {strides = array<i32>} : memref<16x128xf32, #tpu.memory_space<vmem>>, vector<16x128xf32>,
    } else {
    }
    %c0 = arith.constant 0 : index
    %c0_1 = arith.constant 0 : index
    %3 = vector.load %arg7[%c0, %c0_1] : memref<16x128xf32, #tpu.memory_space<vmem>>, vector<16x128xf32>
    %c0_2 = arith.constant 0 : index
    %c0_3 = arith.constant 0 : index
    %4 = vector.load %arg3[%c0_2, %c0_3] : memref<16x128xf32, #tpu.memory_space<vmem>>, vector<16x128xf32>
    %c0_4 = arith.constant 0 : index
    %c0_5 = arith.constant 0 : index
    %5 = vector.load %arg4[%c0_4, %c0_5] : memref<128x128xf32, #tpu.memory_space<vmem>>, vector<128x128xf32>
    %cst = arith.constant dense<0.000000e+00> : vector<16x128xf32>
    %6 = tpu.matmul %4, %5, %cst {dimension_numbers = #tpu.dot_dimension_numbers<[1], [0], [0], [1], [0, 0, 1, 1], [], []>} : vector<16x128xf32>, vector<128x128xf32>, vector<16x128xf32> -> vector<16x128xf32>
    %7 = arith.addf %3, %6 : vector<16x128xf32>
    %c0_6 = arith.constant 0 : index
    %c0_7 = arith.constant 0 : index
    %8 = vector.load %arg7[%c0_6, %c0_7] : memref<16x128xf32, #tpu.memory_space<vmem>>, vector<16x128xf32>
    tpu.vector_store %arg7[%c0_6, %c0_7], %7 {strides = array<i32>} : memref<16x128xf32, #tpu.memory_space<vmem>>, vector<16x128xf32>,
    %c0_i32_8 = arith.constant 0 : i32
    %9 = arith.cmpi eq, %arg2, %c0_i32_8 : i32
    %10 = arith.extui %9 : i1 to i32
    %c0_i32_9 = arith.constant 0 : i32
    %11 = arith.cmpi ne, %10, %c0_i32_9 : i32
    scf.if %11 {
      %c0_10 = arith.constant 0 : index
      %c0_11 = arith.constant 0 : index
      %12 = vector.load %arg7[%c0_10, %c0_11] : memref<16x128xf32, #tpu.memory_space<vmem>>, vector<16x128xf32>
      %c0_12 = arith.constant 0 : index
      %c0_13 = arith.constant 0 : index
      %13 = vector.load %arg5[%c0_12, %c0_13] : memref<1x128xf32, #tpu.memory_space<vmem>>, vector<1x128xf32>
      %14 = vector.broadcast %13 : vector<1x128xf32> to vector<16x128xf32>
      %15 = arith.addf %12, %14 : vector<16x128xf32>
      %cst_14 = arith.constant 0.000000e+00 : f32
      %16 = vector.broadcast %cst_14 : f32 to vector<16x128xf32>
      %17 = arith.maximumf %15, %16 : vector<16x128xf32>
      %c0_15 = arith.constant 0 : index
      %c0_16 = arith.constant 0 : index
      %18 = vector.load %arg6[%c0_15, %c0_16] : memref<16x128xf32, #tpu.memory_space<vmem>>, vector<16x128xf32>
      tpu.vector_store %arg6[%c0_15, %c0_16], %17 {strides = array<i32>} : memref<16x128xf32, #tpu.memory_space<vmem>>, vector<16x128xf32>,
    } else {
    }
    return
  }
  func.func @transform_0(%arg0: i32, %arg1: i32, %arg2: i32) -> (i32, i32) {
    %c0_i32 = arith.constant 0 : i32
    return %arg0, %arg2 : i32, i32
  }
  func.func @transform_1(%arg0: i32, %arg1: i32, %arg2: i32) -> (i32, i32) {
    %c0_i32 = arith.constant 0 : i32
    return %arg2, %arg1 : i32, i32
  }
  func.func @transform_2(%arg0: i32, %arg1: i32, %arg2: i32) -> (i32, i32) {
    %c0_i32 = arith.constant 0 : i32
    %c0_i32_0 = arith.constant 0 : i32
    return %c0_i32, %arg1 : i32, i32
  }
  func.func @transform_3(%arg0: i32, %arg1: i32, %arg2: i32) -> (i32, i32) {
    %c0_i32 = arith.constant 0 : i32
    return %arg0, %arg1 : i32, i32
  }
}

module attributes {stable_mosaic.version = 11 : i64} {
  func.func @_linear_kernel(%arg0: i32, %arg1: i32, %arg2: i32, %arg3: memref<16x128xf32, #tpu.memory_space<vmem>>, %arg4: memref<128x128xf32, #tpu.memory_space<vmem>>, %arg5: memref<1x128xf32, #tpu.memory_space<vmem>>, %arg6: memref<16x128xf32, #tpu.memory_space<vmem>>, %arg7: memref<16x128xf32, #tpu.memory_space<vmem>>) attributes {dimension_semantics = [#tpu.dimension_semantics<parallel>, #tpu.dimension_semantics<parallel>, #tpu.dimension_semantics<arbitrary>], iteration_bounds = array<i64: 1, 1, 1>, scalar_prefetch = 0 : i64, scratch_operands = 1 : i64, tpu.core_type = #tpu.core_type<tc>, window_params = [{transform_indices = @transform_0, window_bounds = array<i64: 16, 128>}, {transform_indices = @transform_1, window_bounds = array<i64: 128, 128>}, {transform_indices = @transform_2, window_bounds = array<i64: 1, 128>}, {transform_indices = @transform_3, window_bounds = array<i64: 16, 128>}]} {
    %c0_i32 = arith.constant 0 : i32
    %0 = arith.cmpi eq, %arg2, %c0_i32 : i32
    %1 = arith.extui %0 : i1 to i32
    %c0_i32_0 = arith.constant 0 : i32
    %2 = arith.cmpi ne, %1, %c0_i32_0 : i32
    scf.if %2 {
      %cst_10 = arith.constant 0.000000e+00 : f32
      %12 = vector.broadcast %cst_10 : f32 to vector<16x128xf32>
      %c0_11 = arith.constant 0 : index
      %c0_12 = arith.constant 0 : index
      %13 = vector.load %arg7[%c0_11, %c0_12] : memref<16x128xf32, #tpu.memory_space<vmem>>, vector<16x128xf32>
      tpu.vector_store %arg7[%c0_11, %c0_12], %12 {strides = array<i32>} : memref<16x128xf32, #tpu.memory_space<vmem>>, vector<16x128xf32>,
    } else {
    }
    %c0 = arith.constant 0 : index
    %c0_1 = arith.constant 0 : index
    %3 = vector.load %arg7[%c0, %c0_1] : memref<16x128xf32, #tpu.memory_space<vmem>>, vector<16x128xf32>
    %c0_2 = arith.constant 0 : index
    %c0_3 = arith.constant 0 : index
    %4 = vector.load %arg3[%c0_2, %c0_3] : memref<16x128xf32, #tpu.memory_space<vmem>>, vector<16x128xf32>
    %c0_4 = arith.constant 0 : index
    %c0_5 = arith.constant 0 : index
    %5 = vector.load %arg4[%c0_4, %c0_5] : memref<128x128xf32, #tpu.memory_space<vmem>>, vector<128x128xf32>
    %cst = arith.constant dense<0.000000e+00> : vector<16x128xf32>
    %6 = tpu.matmul %4, %5, %cst {dimension_numbers = #tpu.dot_dimension_numbers<[1], [0], [0], [1], [0, 0, 1, 1], [], []>} : vector<16x128xf32>, vector<128x128xf32>, vector<16x128xf32> -> vector<16x128xf32>
    %7 = arith.addf %3, %6 : vector<16x128xf32>
    %c0_6 = arith.constant 0 : index
    %c0_7 = arith.constant 0 : index
    %8 = vector.load %arg7[%c0_6, %c0_7] : memref<16x128xf32, #tpu.memory_space<vmem>>, vector<16x128xf32>
    tpu.vector_store %arg7[%c0_6, %c0_7], %7 {strides = array<i32>} : memref<16x128xf32, #tpu.memory_space<vmem>>, vector<16x128xf32>,
    %c0_i32_8 = arith.constant 0 : i32
    %9 = arith.cmpi eq, %arg2, %c0_i32_8 : i32
    %10 = arith.extui %9 : i1 to i32
    %c0_i32_9 = arith.constant 0 : i32
    %11 = arith.cmpi ne, %10, %c0_i32_9 : i32
    scf.if %11 {
      %c0_10 = arith.constant 0 : index
      %c0_11 = arith.constant 0 : index
      %12 = vector.load %arg7[%c0_10, %c0_11] : memref<16x128xf32, #tpu.memory_space<vmem>>, vector<16x128xf32>
      %c0_12 = arith.constant 0 : index
      %c0_13 = arith.constant 0 : index
      %13 = vector.load %arg5[%c0_12, %c0_13] : memref<1x128xf32, #tpu.memory_space<vmem>>, vector<1x128xf32>
      %14 = vector.broadcast %13 : vector<1x128xf32> to vector<16x128xf32>
      %15 = arith.addf %12, %14 : vector<16x128xf32>
      %c0_14 = arith.constant 0 : index
      %c0_15 = arith.constant 0 : index
      %16 = vector.load %arg6[%c0_14, %c0_15] : memref<16x128xf32, #tpu.memory_space<vmem>>, vector<16x128xf32>
      tpu.vector_store %arg6[%c0_14, %c0_15], %15 {strides = array<i32>} : memref<16x128xf32, #tpu.memory_space<vmem>>, vector<16x128xf32>,
    } else {
    }
    return
  }
  func.func @transform_0(%arg0: i32, %arg1: i32, %arg2: i32) -> (i32, i32) {
    %c0_i32 = arith.constant 0 : i32
    return %arg0, %arg2 : i32, i32
  }
  func.func @transform_1(%arg0: i32, %arg1: i32, %arg2: i32) -> (i32, i32) {
    %c0_i32 = arith.constant 0 : i32
    return %arg2, %arg1 : i32, i32
  }
  func.func @transform_2(%arg0: i32, %arg1: i32, %arg2: i32) -> (i32, i32) {
    %c0_i32 = arith.constant 0 : i32
    %c0_i32_0 = arith.constant 0 : i32
    return %c0_i32, %arg1 : i32, i32
  }
  func.func @transform_3(%arg0: i32, %arg1: i32, %arg2: i32) -> (i32, i32) {
    %c0_i32 = arith.constant 0 : i32
    return %arg0, %arg1 : i32, i32
  }
}

module attributes {stable_mosaic.version = 11 : i64} {
  func.func @_linear_kernel(%arg0: i32, %arg1: i32, %arg2: i32, %arg3: memref<8x128xf32, #tpu.memory_space<vmem>>, %arg4: memref<128x128xf32, #tpu.memory_space<vmem>>, %arg5: memref<1x128xf32, #tpu.memory_space<vmem>>, %arg6: memref<8x128xf32, #tpu.memory_space<vmem>>, %arg7: memref<8x128xf32, #tpu.memory_space<vmem>>) attributes {dimension_semantics = [#tpu.dimension_semantics<parallel>, #tpu.dimension_semantics<parallel>, #tpu.dimension_semantics<arbitrary>], iteration_bounds = array<i64: 1, 1, 1>, scalar_prefetch = 0 : i64, scratch_operands = 1 : i64, tpu.core_type = #tpu.core_type<tc>, window_params = [{transform_indices = @transform_0, window_bounds = array<i64: 8, 128>}, {transform_indices = @transform_1, window_bounds = array<i64: 128, 128>}, {transform_indices = @transform_2, window_bounds = array<i64: 1, 128>}, {transform_indices = @transform_3, window_bounds = array<i64: 8, 128>}]} {
    %c0_i32 = arith.constant 0 : i32
    %0 = arith.cmpi eq, %arg2, %c0_i32 : i32
    %1 = arith.extui %0 : i1 to i32
    %c0_i32_0 = arith.constant 0 : i32
    %2 = arith.cmpi ne, %1, %c0_i32_0 : i32
    scf.if %2 {
      %cst_10 = arith.constant 0.000000e+00 : f32
      %12 = vector.broadcast %cst_10 : f32 to vector<8x128xf32>
      %c0_11 = arith.constant 0 : index
      %c0_12 = arith.constant 0 : index
      %13 = vector.load %arg7[%c0_11, %c0_12] : memref<8x128xf32, #tpu.memory_space<vmem>>, vector<8x128xf32>
      tpu.vector_store %arg7[%c0_11, %c0_12], %12 {strides = array<i32>} : memref<8x128xf32, #tpu.memory_space<vmem>>, vector<8x128xf32>,
    } else {
    }
    %c0 = arith.constant 0 : index
    %c0_1 = arith.constant 0 : index
    %3 = vector.load %arg7[%c0, %c0_1] : memref<8x128xf32, #tpu.memory_space<vmem>>, vector<8x128xf32>
    %c0_2 = arith.constant 0 : index
    %c0_3 = arith.constant 0 : index
    %4 = vector.load %arg3[%c0_2, %c0_3] : memref<8x128xf32, #tpu.memory_space<vmem>>, vector<8x128xf32>
    %c0_4 = arith.constant 0 : index
    %c0_5 = arith.constant 0 : index
    %5 = vector.load %arg4[%c0_4, %c0_5] : memref<128x128xf32, #tpu.memory_space<vmem>>, vector<128x128xf32>
    %cst = arith.constant dense<0.000000e+00> : vector<8x128xf32>
    %6 = tpu.matmul %4, %5, %cst {dimension_numbers = #tpu.dot_dimension_numbers<[1], [0], [0], [1], [0, 0, 1, 1], [], []>} : vector<8x128xf32>, vector<128x128xf32>, vector<8x128xf32> -> vector<8x128xf32>
    %7 = arith.addf %3, %6 : vector<8x128xf32>
    %c0_6 = arith.constant 0 : index
    %c0_7 = arith.constant 0 : index
    %8 = vector.load %arg7[%c0_6, %c0_7] : memref<8x128xf32, #tpu.memory_space<vmem>>, vector<8x128xf32>
    tpu.vector_store %arg7[%c0_6, %c0_7], %7 {strides = array<i32>} : memref<8x128xf32, #tpu.memory_space<vmem>>, vector<8x128xf32>,
    %c0_i32_8 = arith.constant 0 : i32
    %9 = arith.cmpi eq, %arg2, %c0_i32_8 : i32
    %10 = arith.extui %9 : i1 to i32
    %c0_i32_9 = arith.constant 0 : i32
    %11 = arith.cmpi ne, %10, %c0_i32_9 : i32
    scf.if %11 {
      %c0_10 = arith.constant 0 : index
      %c0_11 = arith.constant 0 : index
      %12 = vector.load %arg7[%c0_10, %c0_11] : memref<8x128xf32, #tpu.memory_space<vmem>>, vector<8x128xf32>
      %c0_12 = arith.constant 0 : index
      %c0_13 = arith.constant 0 : index
      %13 = vector.load %arg5[%c0_12, %c0_13] : memref<1x128xf32, #tpu.memory_space<vmem>>, vector<1x128xf32>
      %14 = vector.broadcast %13 : vector<1x128xf32> to vector<8x128xf32>
      %15 = arith.addf %12, %14 : vector<8x128xf32>
      %c0_14 = arith.constant 0 : index
      %c0_15 = arith.constant 0 : index
      %16 = vector.load %arg6[%c0_14, %c0_15] : memref<8x128xf32, #tpu.memory_space<vmem>>, vector<8x128xf32>
      tpu.vector_store %arg6[%c0_14, %c0_15], %15 {strides = array<i32>} : memref<8x128xf32, #tpu.memory_space<vmem>>, vector<8x128xf32>,
    } else {
    }
    return
  }
  func.func @transform_0(%arg0: i32, %arg1: i32, %arg2: i32) -> (i32, i32) {
    %c0_i32 = arith.constant 0 : i32
    return %arg0, %arg2 : i32, i32
  }
  func.func @transform_1(%arg0: i32, %arg1: i32, %arg2: i32) -> (i32, i32) {
    %c0_i32 = arith.constant 0 : i32
    return %arg2, %arg1 : i32, i32
  }
  func.func @transform_2(%arg0: i32, %arg1: i32, %arg2: i32) -> (i32, i32) {
    %c0_i32 = arith.constant 0 : i32
    %c0_i32_0 = arith.constant 0 : i32
    return %c0_i32, %arg1 : i32, i32
  }
  func.func @transform_3(%arg0: i32, %arg1: i32, %arg2: i32) -> (i32, i32) {
    %c0_i32 = arith.constant 0 : i32
    return %arg0, %arg1 : i32, i32
  }
}

</mosaic_0001>

<bundles_post_ra>
// kernel: classifier_forward.7
= control target key start
LH: loop header
LB: loop body
LE: loop exit
PB: predicated region body
PF: predicated region fallthrough
CT: control target
= control target key end

     0   :  { %s278_s1 = inlined_call_operand.vmem [shape: f32[128,128], index: 1, kind: input, shape index: {}]   ;;  %s279_s0 = inlined_call_operand.vmem [shape: f32[16,128], index: 0, kind: input, shape index: {}]   ;;  %s280_s2 = inlined_call_operand.vmem [shape: f32[1,128], index: 2, kind: input, shape index: {}]   ;;  %s281_s3 = inlined_call_operand.vmem [shape: f32[16,128], index: 3, kind: output, shape index: {}]  }
   0x1   :  { %v39_v0 = vld [vmem:[%s278_s1 + $0x78] sm:$0xff]  ;;  %v38_v1 = vld [vmem:[%s278_s1 + $0x70] sm:$0xff]  ;;  %v37_v2 = vld [vmem:[%s278_s1 + $0x68] sm:$0xff] }
   0x2   :  { %160 = vmatprep.subr.mxu0 %v39_v0  ;;  %v36_v3 = vld [vmem:[%s278_s1 + $0x60] sm:$0xff]  ;;  %v35_v5 = vld [vmem:[%s278_s1 + $0x58] sm:$0xff]  ;;  %v34_v6 = vld [vmem:[%s278_s1 + $0x50] sm:$0xff] }
   0x3   :  { %161 = vmatpush3.msra.mxu0 %v39_v0  ;;  %v22_v4 = vld [vmem:[%s279_s0] sm:$0xff]  ;;  %v33_v7 = vld [vmem:[%s278_s1 + $0x48] sm:$0xff]  ;;  %v31_v9 = vld [vmem:[%s278_s1 + $0x38] sm:$0xff] }
   0x4   :  { %162 = vmatprep.subr.mxu0 %v38_v1  ;;  %192 = vmatprep.mubr.f32.mxu0 %v22_v4  ;;  %v32_v8 = vld [vmem:[%s278_s1 + $0x40] sm:$0xff]  ;;  %v30_v10 = vld [vmem:[%s278_s1 + $0x30] sm:$0xff]  ;;  %v29_v11 = vld [vmem:[%s278_s1 + $0x28] sm:$0xff] }
   0x5   :  { %163 = vmatpush3.msra.mxu0 %v38_v1  ;;  %v28_v12 = vld [vmem:[%s278_s1 + $0x20] sm:$0xff]  ;;  %v27_v13 = vld [vmem:[%s278_s1 + $0x18] sm:$0xff]  ;;  %v26_v14 = vld [vmem:[%s278_s1 + $0x10] sm:$0xff] }
   0x6   :  { %164 = vmatprep.subr.mxu0 %v37_v2  ;;  %v25_v15 = vld [vmem:[%s278_s1 + $0x8] sm:$0xff]  ;;  %v24_v16 = vld [vmem:[%s278_s1] sm:$0xff] }
   0x7   :  { %165 = vmatpush3.msra.mxu0 %v37_v2  ;;  %v23_v17 = vld [vmem:[%s279_s0 + $0x8] sm:$0xff]  ;;  %v141_v18 = vld [vmem:[%s280_s2] ss:$0 sm:$0xff] }
   0x8   :  { %166 = vmatprep.subr.mxu0 %v36_v3 }
   0x9   :  { %167 = vmatpush3.msra.mxu0 %v36_v3 }
   0xa   :  { %168 = vmatprep.subr.mxu0 %v35_v5 }
   0xb   :  { %169 = vmatpush3.msra.mxu0 %v35_v5 }
   0xc   :  { %170 = vmatprep.subr.mxu0 %v34_v6 }
   0xd   :  { %171 = vmatpush3.msra.mxu0 %v34_v6 }
   0xe   :  { %172 = vmatprep.subr.mxu0 %v33_v7 }
   0xf   :  { %173 = vmatpush3.msra.mxu0 %v33_v7 }
  0x10   :  { %174 = vmatprep.subr.mxu0 %v32_v8 }
  0x11   :  { %175 = vmatpush3.msra.mxu0 %v32_v8 }
  0x12   :  { %176 = vmatprep.subr.mxu0 %v31_v9 }
  0x13   :  { %177 = vmatpush3.msra.mxu0 %v31_v9 }
  0x14   :  { %178 = vmatprep.subr.mxu0 %v30_v10 }
  0x15   :  { %179 = vmatpush3.msra.mxu0 %v30_v10 }
  0x16   :  { %180 = vmatprep.subr.mxu0 %v29_v11 }
  0x17   :  { %181 = vmatpush3.msra.mxu0 %v29_v11 }
  0x18   :  { %182 = vmatprep.subr.mxu0 %v28_v12 }
  0x19   :  { %183 = vmatpush3.msra.mxu0 %v28_v12 }
  0x1a   :  { %184 = vmatprep.subr.mxu0 %v27_v13 }
  0x1b   :  { %185 = vmatpush3.msra.mxu0 %v27_v13 }
  0x1c   :  { %186 = vmatprep.subr.mxu0 %v26_v14 }
  0x1d   :  { %187 = vmatpush3.msra.mxu0 %v26_v14 }
  0x1e   :  { %188 = vmatprep.subr.mxu0 %v25_v15 }
  0x1f   :  { %189 = vmatpush3.msra.mxu0 %v25_v15 }
  0x20   :  { %190 = vmatprep.subr.mxu0 %v24_v16 }
  0x21   :  { %191 = vmatpush3.msra.mxu0 %v24_v16 }
  0x22   :  { %193 = vmatmul.mubr.f32.vlgmr.msra.gmra.mxu0 %v23_v17 }
  0xe2   :  { %v194_v19 = vpop.f32.mrf.mxu0 }
  0xe3   :  { %v132_v20 = vadd.f32 %v194_v19, %v141_v18 }
  0xe4   :  { %v106_v21 = vpop.f32.mrf.mxu0 }
  0xe5   :  { %v134_v22 = vmax.f32 %v132_v20, 0.0  ;;  %v131_v23 = vadd.f32 %v141_v18, %v106_v21 }
  0xe7   :  { %136 = vst [vmem:[%s281_s3 + $0x8] sm:$0xff] %v134_v22  ;;  %v133_v24 = vmax.f32 %v131_v23, 0.0 }
  0xe9   :  { %135 = vst [vmem:[%s281_s3] sm:$0xff] %v133_v24 }

// kernel: classifier_forward.6
= control target key start
LH: loop header
LB: loop body
LE: loop exit
PB: predicated region body
PF: predicated region fallthrough
CT: control target
= control target key end

     0   :  { %s276_s1 = inlined_call_operand.vmem [shape: f32[128,128], index: 1, kind: input, shape index: {}]   ;;  %s277_s0 = inlined_call_operand.vmem [shape: f32[16,128], index: 0, kind: input, shape index: {}]   ;;  %s278_s2 = inlined_call_operand.vmem [shape: f32[1,128], index: 2, kind: input, shape index: {}]   ;;  %s279_s3 = inlined_call_operand.vmem [shape: f32[16,128], index: 3, kind: output, shape index: {}]  }
   0x1   :  { %v39_v0 = vld [vmem:[%s276_s1 + $0x78] sm:$0xff]  ;;  %v38_v1 = vld [vmem:[%s276_s1 + $0x70] sm:$0xff]  ;;  %v37_v2 = vld [vmem:[%s276_s1 + $0x68] sm:$0xff] }
   0x2   :  { %158 = vmatprep.subr.mxu0 %v39_v0  ;;  %v36_v3 = vld [vmem:[%s276_s1 + $0x60] sm:$0xff]  ;;  %v35_v5 = vld [vmem:[%s276_s1 + $0x58] sm:$0xff]  ;;  %v34_v6 = vld [vmem:[%s276_s1 + $0x50] sm:$0xff] }
   0x3   :  { %159 = vmatpush3.msra.mxu0 %v39_v0  ;;  %v22_v4 = vld [vmem:[%s277_s0] sm:$0xff]  ;;  %v33_v7 = vld [vmem:[%s276_s1 + $0x48] sm:$0xff]  ;;  %v31_v9 = vld [vmem:[%s276_s1 + $0x38] sm:$0xff] }
   0x4   :  { %160 = vmatprep.subr.mxu0 %v38_v1  ;;  %190 = vmatprep.mubr.f32.mxu0 %v22_v4  ;;  %v32_v8 = vld [vmem:[%s276_s1 + $0x40] sm:$0xff]  ;;  %v30_v10 = vld [vmem:[%s276_s1 + $0x30] sm:$0xff]  ;;  %v29_v11 = vld [vmem:[%s276_s1 + $0x28] sm:$0xff] }
   0x5   :  { %161 = vmatpush3.msra.mxu0 %v38_v1  ;;  %v28_v12 = vld [vmem:[%s276_s1 + $0x20] sm:$0xff]  ;;  %v27_v13 = vld [vmem:[%s276_s1 + $0x18] sm:$0xff]  ;;  %v26_v14 = vld [vmem:[%s276_s1 + $0x10] sm:$0xff] }
   0x6   :  { %162 = vmatprep.subr.mxu0 %v37_v2  ;;  %v25_v15 = vld [vmem:[%s276_s1 + $0x8] sm:$0xff]  ;;  %v24_v16 = vld [vmem:[%s276_s1] sm:$0xff] }
   0x7   :  { %163 = vmatpush3.msra.mxu0 %v37_v2  ;;  %v23_v17 = vld [vmem:[%s277_s0 + $0x8] sm:$0xff]  ;;  %v139_v18 = vld [vmem:[%s278_s2] ss:$0 sm:$0xff] }
   0x8   :  { %164 = vmatprep.subr.mxu0 %v36_v3 }
   0x9   :  { %165 = vmatpush3.msra.mxu0 %v36_v3 }
   0xa   :  { %166 = vmatprep.subr.mxu0 %v35_v5 }
   0xb   :  { %167 = vmatpush3.msra.mxu0 %v35_v5 }
   0xc   :  { %168 = vmatprep.subr.mxu0 %v34_v6 }
   0xd   :  { %169 = vmatpush3.msra.mxu0 %v34_v6 }
   0xe   :  { %170 = vmatprep.subr.mxu0 %v33_v7 }
   0xf   :  { %171 = vmatpush3.msra.mxu0 %v33_v7 }
  0x10   :  { %172 = vmatprep.subr.mxu0 %v32_v8 }
  0x11   :  { %173 = vmatpush3.msra.mxu0 %v32_v8 }
  0x12   :  { %174 = vmatprep.subr.mxu0 %v31_v9 }
  0x13   :  { %175 = vmatpush3.msra.mxu0 %v31_v9 }
  0x14   :  { %176 = vmatprep.subr.mxu0 %v30_v10 }
  0x15   :  { %177 = vmatpush3.msra.mxu0 %v30_v10 }
  0x16   :  { %178 = vmatprep.subr.mxu0 %v29_v11 }
  0x17   :  { %179 = vmatpush3.msra.mxu0 %v29_v11 }
  0x18   :  { %180 = vmatprep.subr.mxu0 %v28_v12 }
  0x19   :  { %181 = vmatpush3.msra.mxu0 %v28_v12 }
  0x1a   :  { %182 = vmatprep.subr.mxu0 %v27_v13 }
  0x1b   :  { %183 = vmatpush3.msra.mxu0 %v27_v13 }
  0x1c   :  { %184 = vmatprep.subr.mxu0 %v26_v14 }
  0x1d   :  { %185 = vmatpush3.msra.mxu0 %v26_v14 }
  0x1e   :  { %186 = vmatprep.subr.mxu0 %v25_v15 }
  0x1f   :  { %187 = vmatpush3.msra.mxu0 %v25_v15 }
  0x20   :  { %188 = vmatprep.subr.mxu0 %v24_v16 }
  0x21   :  { %189 = vmatpush3.msra.mxu0 %v24_v16 }
  0x22   :  { %191 = vmatmul.mubr.f32.vlgmr.msra.gmra.mxu0 %v23_v17 }
  0xe2   :  { %v192_v19 = vpop.f32.mrf.mxu0 }
  0xe3   :  { %v132_v20 = vadd.f32 %v192_v19, %v139_v18 }
  0xe4   :  { %v106_v21 = vpop.f32.mrf.mxu0 }
  0xe5   :  { %134 = vst [vmem:[%s279_s3 + $0x8] sm:$0xff] %v132_v20  ;;  %v131_v22 = vadd.f32 %v139_v18, %v106_v21 }
  0xe7   :  { %133 = vst [vmem:[%s279_s3] sm:$0xff] %v131_v22 }

// kernel: classifier_forward.10
= control target key start
LH: loop header
LB: loop body
LE: loop exit
PB: predicated region body
PF: predicated region fallthrough
CT: control target
= control target key end

     0   :  { %v181_v0 = vmov 0.0   ;;  %vm182_vm0 = vmmov 0   ;;  %s260_s1 = inlined_call_operand.vmem [shape: f32[128,128], index: 1, kind: input, shape index: {}]   ;;  %s261_s0 = inlined_call_operand.vmem [shape: f32[8,128], index: 0, kind: input, shape index: {}]   ;;  %s262_s2 = inlined_call_operand.vmem [shape: f32[1,128], index: 2, kind: input, shape index: {}]   ;;  %s263_s3 = inlined_call_operand.vmem [shape: f32[8,128], index: 3, kind: output, shape index: {}]  }
   0x1   :  { %144 = vmatprep.subr.mxu0 %v181_v0  ;;  %v36_v1 = vld [vmem:[%s260_s1 + $0x78] sm:$0xff]  ;;  %v35_v2 = vld [vmem:[%s260_s1 + $0x70] sm:$0xff]  ;;  %176 = vmatprep.mubr.msk.f32.mxu0 %vm182_vm0, %v181_v0  ;;  %v34_v3 = vld [vmem:[%s260_s1 + $0x68] sm:$0xff] }
   0x2   :  { %145 = vmatpush3.msra.mxu0 %v36_v1  ;;  %v33_v4 = vld [vmem:[%s260_s1 + $0x60] sm:$0xff]  ;;  %v32_v5 = vld [vmem:[%s260_s1 + $0x58] sm:$0xff]  ;;  %v31_v6 = vld [vmem:[%s260_s1 + $0x50] sm:$0xff] }
   0x3   :  { %146 = vmatprep.subr.mxu0 %v181_v0  ;;  %v30_v7 = vld [vmem:[%s260_s1 + $0x48] sm:$0xff]  ;;  %v29_v8 = vld [vmem:[%s260_s1 + $0x40] sm:$0xff]  ;;  %v28_v9 = vld [vmem:[%s260_s1 + $0x38] sm:$0xff] }
   0x4   :  { %147 = vmatpush3.msra.mxu0 %v35_v2  ;;  %v27_v10 = vld [vmem:[%s260_s1 + $0x30] sm:$0xff]  ;;  %v26_v11 = vld [vmem:[%s260_s1 + $0x28] sm:$0xff]  ;;  %v25_v12 = vld [vmem:[%s260_s1 + $0x20] sm:$0xff] }
   0x5   :  { %148 = vmatprep.subr.mxu0 %v181_v0  ;;  %v24_v13 = vld [vmem:[%s260_s1 + $0x18] sm:$0xff]  ;;  %v23_v14 = vld [vmem:[%s260_s1 + $0x10] sm:$0xff]  ;;  %v22_v15 = vld [vmem:[%s260_s1 + $0x8] sm:$0xff] }
   0x6   :  { %149 = vmatpush3.msra.mxu0 %v34_v3  ;;  %v21_v16 = vld [vmem:[%s260_s1] sm:$0xff] }
   0x7   :  { %150 = vmatprep.subr.mxu0 %v181_v0  ;;  %v20_v17 = vld [vmem:[%s261_s0] sm:$0xff] }
   0x8   :  { %151 = vmatpush3.msra.mxu0 %v33_v4  ;;  %v126_v18 = vld [vmem:[%s262_s2] ss:$0 sm:$0xff] }
   0x9   :  { %152 = vmatprep.subr.mxu0 %v181_v0 }
   0xa   :  { %153 = vmatpush3.msra.mxu0 %v32_v5 }
   0xb   :  { %154 = vmatprep.subr.mxu0 %v181_v0 }
   0xc   :  { %155 = vmatpush3.msra.mxu0 %v31_v6 }
   0xd   :  { %156 = vmatprep.subr.mxu0 %v181_v0 }
   0xe   :  { %157 = vmatpush3.msra.mxu0 %v30_v7 }
   0xf   :  { %158 = vmatprep.subr.mxu0 %v181_v0 }
  0x10   :  { %159 = vmatpush3.msra.mxu0 %v29_v8 }
  0x11   :  { %160 = vmatprep.subr.mxu0 %v181_v0 }
  0x12   :  { %161 = vmatpush3.msra.mxu0 %v28_v9 }
  0x13   :  { %162 = vmatprep.subr.mxu0 %v181_v0 }
  0x14   :  { %163 = vmatpush3.msra.mxu0 %v27_v10 }
  0x15   :  { %164 = vmatprep.subr.mxu0 %v181_v0 }
  0x16   :  { %165 = vmatpush3.msra.mxu0 %v26_v11 }
  0x17   :  { %166 = vmatprep.subr.mxu0 %v181_v0 }
  0x18   :  { %167 = vmatpush3.msra.mxu0 %v25_v12 }
  0x19   :  { %168 = vmatprep.subr.mxu0 %v181_v0 }
  0x1a   :  { %169 = vmatpush3.msra.mxu0 %v24_v13 }
  0x1b   :  { %170 = vmatprep.subr.mxu0 %v181_v0 }
  0x1c   :  { %171 = vmatpush3.msra.mxu0 %v23_v14 }
  0x1d   :  { %172 = vmatprep.subr.mxu0 %v181_v0 }
  0x1e   :  { %173 = vmatpush3.msra.mxu0 %v22_v15 }
  0x1f   :  { %174 = vmatprep.subr.mxu0 %v181_v0 }
  0x20   :  { %175 = vmatpush3.msra.mxu0 %v21_v16 }
  0x21   :  { %177 = vmatmul.mubr.f32.vlgmr.msra.gmra.mxu0 %v20_v17 }
  0xe1   :  { %v103_v19 = vpop.f32.mrf.mxu0 }
  0xe2   :  { %v120_v20 = vadd.f32 %v126_v18, %v103_v19 }
  0xe3   :  { %v178_v21 = vpop.f32.mrf.mxu0 }
  0xe4   :  { %121 = vst [vmem:[%s263_s3] sm:$0xff] %v120_v20 }

</bundles_post_ra>
